<compile_context>
chip_gen: v7x
topology: tpu7x:2x2x1
jax: 0.10.0
libtpu: 0.0.40
codegen_flags: <defaults>
</compile_context>

<pallas_src>
import math

import jax
import jax.numpy as jnp
from jax.experimental import pallas as pl
from jax.experimental.pallas import tpu as pltpu

_LANE = 128


def _classifier_head_kernel(x_ref, w_ref, b_ref, o_ref):
    # x_ref: (TB, C, HW)  feature-map tile in native NCHW layout (H*W on lanes)
    # w_ref: (C, N_PAD)   Linear weight, pre-transposed, pre-scaled by 1/HW, padded
    # b_ref: (1, N_PAD)   Linear bias, zero-padded
    # o_ref: (TB, N_PAD)  logits (lane-dense, padded)
    #
    # Global average pool == sum over the minor HW axis (1/HW folded into w).
    # The cross-lane reduce (XLU) and the tiny matmul (MXU) are fully hidden
    # under the x DMA -- the kernel is HBM-bandwidth bound.
    feats = jnp.sum(x_ref[...].astype(jnp.float32), axis=-1)          # (TB, C)
    o_ref[...] = (
        jnp.dot(feats, w_ref[...], preferred_element_type=jnp.float32)
        + b_ref[...]
    )


def _pick_batch_tile(B, per_row_bytes, fixed_bytes, budget_bytes):
    """Batch tile: fits the VMEM budget, prefers >=4-8 grid steps, divides B."""
    avail = max(budget_bytes - fixed_bytes, per_row_bytes)
    tb = max(1, int(avail // per_row_bytes))
    if B <= 8:
        return B                        # tiny batch: one full-extent tile
    # Keep several grid steps so ("parallel",) can shard tiles across the two
    # TensorCores on v7x and the DMA pipeline overlaps fetch/compute/writeback,
    # but never shrink a tile below ~2 MiB of x traffic (per-step overhead).
    min_rows = max(8, int((2 << 20) // max(per_row_bytes, 1)))
    target = max(min_rows, -(-B // 8))  # aim for ~8 tiles when traffic allows
    tb = min(tb, target)
    if tb >= B:
        return B
    tb = max(8, (tb // 8) * 8)          # sublane-aligned multi-tile
    for cand in range(tb, 7, -8):       # prefer exact divisors of B (no ragged tile)
        if B % cand == 0:
            return cand
    return min(tb, B)                   # ragged last tile handled by Pallas masking


def wrapping_classifier_forward(x_nchw, w, b, *, batch_tile=None):
    """Forward of WrappingClassifier (is_full=False) on a backbone feature map.

    x_nchw : (B, C, H, W) feature map, any float dtype (bf16 halves HBM traffic
             and is recommended on v5e/v6e; the pool accumulates in f32).
    w      : (n_cls, C)   torch.nn.Linear weight.
    b      : (n_cls,)     torch.nn.Linear bias.
    returns: (B, n_cls) float32 logits.
    """
    B, C, H, W = x_nchw.shape
    HW = H * W
    n_cls = w.shape[0]
    n_pad = ((n_cls + _LANE - 1) // _LANE) * _LANE   # 128-granularity only (HBM-bound)

    # Free reshape (no transpose, no extra HBM traffic): NCHW -> (B, C, HW).
    x = x_nchw.reshape(B, C, HW)

    # Fold 1/HW into the tiny weight; pad classes to a lane-dense 128.
    w_t = jnp.pad(w.astype(jnp.float32).T / float(HW), ((0, 0), (0, n_pad - n_cls)))
    b_p = jnp.pad(b.astype(jnp.float32)[None, :], ((0, 0), (0, n_pad - n_cls)))

    # --- generation-aware VMEM budgeting -------------------------------------
    try:
        vmem_cap = int(pltpu.get_tpu_info().vmem_capacity_bytes)
    except Exception:
        vmem_cap = 64 << 20                     # v7x-conservative fallback
    # ~48 MiB ceiling on v7x (64 MiB/TC), ~96 MiB on v5e/v6e (128 MiB/TC).
    limit_cap = max(min(vmem_cap * 3 // 4, vmem_cap - (12 << 20)), 16 << 20)
    budget = limit_cap - (6 << 20)              # Mosaic internal-scratch headroom

    bpe = jnp.dtype(x.dtype).itemsize
    cast_row = HW * C * 4 if bpe < 4 else 0     # f32 upcast temp for the pool reduce
    per_row = 2 * HW * C * bpe + cast_row + 2 * n_pad * 4 + C * 4
    fixed = 2 * C * n_pad * 4 + 2 * 8 * n_pad * 4   # resident weight + bias buffers

    if batch_tile is None:
        tb = _pick_batch_tile(B, per_row, fixed, budget)
    else:
        tb = max(1, min(int(batch_tile), B))
    n_tiles = pl.cdiv(B, tb)

    vmem_limit = int(max(min(limit_cap, fixed + tb * per_row + (6 << 20)), 8 << 20))

    cost = pl.CostEstimate(
        flops=B * C * HW + 2 * B * C * n_pad,
        transcendentals=0,
        bytes_accessed=(B * HW * C * bpe + C * n_pad * 4 + n_pad * 4
                        + B * n_pad * 4),
    )

    out = pl.pallas_call(
        _classifier_head_kernel,
        out_shape=jax.ShapeDtypeStruct((B, n_pad), jnp.float32),
        grid_spec=pltpu.PrefetchScalarGridSpec(
            num_scalar_prefetch=0,
            grid=(n_tiles,),
            in_specs=[
                pl.BlockSpec((tb, C, HW), lambda i: (i, 0, 0)),   # batch-tiled x
                pl.BlockSpec((C, n_pad), lambda i: (0, 0)),       # resident weight
                pl.BlockSpec((1, n_pad), lambda i: (0, 0)),       # resident bias
            ],
            out_specs=pl.BlockSpec((tb, n_pad), lambda i: (i, 0)),
        ),
        compiler_params=pltpu.CompilerParams(
            dimension_semantics=("parallel",),   # shard batch tiles across TCs (v7x)
            vmem_limit_bytes=vmem_limit,
        ),
        cost_estimate=cost,
    )(x, w_t, b_p)

    return out[:, :n_cls]


if __name__ == "__main__":
    # Small shapes consistent with the forward:
    #   backbone feature map (B=2, num_ftrs=32, H=8, W=8), n_cls=10
    B, C, H, W, N_CLS = 2, 32, 8, 8, 10

    key = jax.random.PRNGKey(0)
    kx, kw, kb = jax.random.split(key, 3)

    x = jax.random.normal(kx, (B, C, H, W), dtype=jnp.float32)

    # Deterministic nn.Linear-style init: U(-1/sqrt(in), 1/sqrt(in)).
    bound = 1.0 / math.sqrt(C)
    w = jax.random.uniform(kw, (N_CLS, C), minval=-bound, maxval=bound,
                           dtype=jnp.float32)
    b = jax.random.uniform(kb, (N_CLS,), minval=-bound, maxval=bound,
                           dtype=jnp.float32)

    def ref_forward(x_):
        feats = jnp.mean(x_.astype(jnp.float32).reshape(x_.shape[0], C, H * W),
                         axis=-1)
        return feats @ w.T + b

    # 1) f32 feature map (single-tile path).
    out = jax.block_until_ready(wrapping_classifier_forward(x, w, b))
    assert out.shape == (B, N_CLS)
    assert jnp.allclose(out, ref_forward(x), atol=1e-4, rtol=1e-4)

    # 2) bf16 feature map (recommended on v5e/v6e: halves HBM traffic of a
    #    memory-bound kernel; the pool still accumulates in f32).
    x_bf16 = x.astype(jnp.bfloat16)
    out_bf = jax.block_until_ready(wrapping_classifier_forward(x_bf16, w, b))
    assert jnp.allclose(out_bf, ref_forward(x_bf16), atol=5e-2, rtol=5e-2)

    # 3) Multi-tile pipelined path (forced small batch tile) at B=24.
    xb = jax.random.normal(kx, (24, C, H, W), dtype=jnp.float32)
    out_mt = jax.block_until_ready(
        wrapping_classifier_forward(xb, w, b, batch_tile=8))
    assert out_mt.shape == (24, N_CLS)
    assert jnp.allclose(out_mt, ref_forward(xb), atol=1e-4, rtol=1e-4)

    print("KERNEL_OK")
</pallas_src>

<mosaic_0001>
module attributes {stable_mosaic.version = 11 : i64} {
  func.func @_classifier_head_kernel(%arg0: i32, %arg1: memref<2x32x64xf32, #tpu.memory_space<vmem>>, %arg2: memref<32x128xf32, #tpu.memory_space<vmem>>, %arg3: memref<1x128xf32, #tpu.memory_space<vmem>>, %arg4: memref<2x128xf32, #tpu.memory_space<vmem>>) attributes {dimension_semantics = [#tpu.dimension_semantics<parallel>], iteration_bounds = array<i64: 1>, scalar_prefetch = 0 : i64, scratch_operands = 0 : i64, tpu.core_type = #tpu.core_type<tc>, window_params = [{transform_indices = @transform_0, window_bounds = array<i64: 2, 32, 64>}, {pipeline_mode = #tpu.pipeline_mode<synchronous>, transform_indices = @transform_1, window_bounds = array<i64: 32, 128>}, {pipeline_mode = #tpu.pipeline_mode<synchronous>, transform_indices = @transform_2, window_bounds = array<i64: 1, 128>}, {transform_indices = @transform_3, window_bounds = array<i64: 2, 128>}]} {
    %c0 = arith.constant 0 : index
    %c0_0 = arith.constant 0 : index
    %c0_1 = arith.constant 0 : index
    %0 = vector.load %arg1[%c0, %c0_0, %c0_1] : memref<2x32x64xf32, #tpu.memory_space<vmem>>, vector<2x32x64xf32>
    %cst = arith.constant dense<0.000000e+00> : vector<2x32xf32>
    %1 = vector.multi_reduction <add>, %0, %cst [2] : vector<2x32x64xf32> to vector<2x32xf32>
    %c0_2 = arith.constant 0 : index
    %c0_3 = arith.constant 0 : index
    %2 = vector.load %arg2[%c0_2, %c0_3] : memref<32x128xf32, #tpu.memory_space<vmem>>, vector<32x128xf32>
    %cst_4 = arith.constant dense<0.000000e+00> : vector<2x128xf32>
    %3 = tpu.matmul %1, %2, %cst_4 {dimension_numbers = #tpu.dot_dimension_numbers<[1], [0], [0], [1], [0, 0, 1, 1], [], []>} : vector<2x32xf32>, vector<32x128xf32>, vector<2x128xf32> -> vector<2x128xf32>
    %c0_5 = arith.constant 0 : index
    %c0_6 = arith.constant 0 : index
    %4 = vector.load %arg3[%c0_5, %c0_6] : memref<1x128xf32, #tpu.memory_space<vmem>>, vector<1x128xf32>
    %5 = vector.broadcast %4 : vector<1x128xf32> to vector<2x128xf32>
    %6 = arith.addf %3, %5 : vector<2x128xf32>
    %c0_7 = arith.constant 0 : index
    %c0_8 = arith.constant 0 : index
    %7 = vector.load %arg4[%c0_7, %c0_8] : memref<2x128xf32, #tpu.memory_space<vmem>>, vector<2x128xf32>
    tpu.vector_store %arg4[%c0_7, %c0_8], %6 {strides = array<i32>} : memref<2x128xf32, #tpu.memory_space<vmem>>, vector<2x128xf32>,
    return
  }
  func.func @transform_0(%arg0: i32) -> (i32, i32, i32) {
    %c0_i32 = arith.constant 0 : i32
    %c0_i32_0 = arith.constant 0 : i32
    %c0_i32_1 = arith.constant 0 : i32
    return %arg0, %c0_i32, %c0_i32_0 : i32, i32, i32
  }
  func.func @transform_1(%arg0: i32) -> (i32, i32) {
    %c0_i32 = arith.constant 0 : i32
    %c0_i32_0 = arith.constant 0 : i32
    %c0_i32_1 = arith.constant 0 : i32
    return %c0_i32, %c0_i32_0 : i32, i32
  }
  func.func @transform_2(%arg0: i32) -> (i32, i32) {
    %c0_i32 = arith.constant 0 : i32
    %c0_i32_0 = arith.constant 0 : i32
    %c0_i32_1 = arith.constant 0 : i32
    return %c0_i32, %c0_i32_0 : i32, i32
  }
  func.func @transform_3(%arg0: i32) -> (i32, i32) {
    %c0_i32 = arith.constant 0 : i32
    %c0_i32_0 = arith.constant 0 : i32
    return %arg0, %c0_i32 : i32, i32
  }
}

</mosaic_0001>

<bundles_post_ra>
// kernel: tpu_custom_call.1
= control target key start
LH: loop header
LB: loop body
LE: loop exit
PB: predicated region body
PF: predicated region fallthrough
CT: control target
= control target key end

     0   :  { %8 = vsyncpa [#allocation3], 0  ;;  %s412_s0 = inlined_call_operand.hbm [shape: f32[2,32,64], index: 0, kind: input, shape index: {}]   ;;  %s413_s1 = inlined_call_operand.hbm [shape: f32[32,128], index: 1, kind: input, shape index: {}]   ;;  %s414_s2 = inlined_call_operand.vmem [shape: f32[1,128], index: 2, kind: input, shape index: {}]   ;;  %s415_s3 = inlined_call_operand.hbm [shape: f32[2,128], index: 3, kind: output, shape index: {}]  }
   0x1   :  { %9 = vsyncpa [#allocation6], 0 }
   0x2   :  { %10 = vsyncpa [#allocation4], 0  ;;  %s337_s12 = smov [#allocation2]   ;;  %s265_s16 = scalar_lea.hbm %s412_s0, 1024 }
   0x3   :  { %s16_s13 = sshll.u32 %s337_s12, 4  ;;  %p266_p0 = scmp.ne.s32.totalorder %s412_s0, %s265_s16  ;;  %s17_s13 = int_to_ptr.vmem [resolvable:$true] %s16_s13 }
   0x4   :  { %p269_p1 = scmp.lt.u32.totalorder %s265_s16, %s412_s0 }
   0x6   :  { %p271_p2 = pnand %p269_p1, %p266_p0 }
   0x8   :  { %274 = shalt.err (!%p271_p2)
}
   0x9   :  { %s275_s21 = scalar_lea.vmem %s17_s13, 1024  ;;  %p280_p4 = scmp.lt.s32.totalorder %s17_s13, %s17_s13 }
   0xa   :  { %p276_p3 = scmp.ne.s32.totalorder %s17_s13, %s275_s21  ;;  %p281_p5 = scmp.lt.s32.totalorder %s275_s21, %s275_s21 }
   0xc   :  { %p282_p6 = por %p281_p5, %p280_p4 }
   0xe   :  { %p283_p7 = pnand %p282_p6, %p276_p3 }
  0x10   :  { %286 = shalt.err (!%p283_p7)
}
  0x11   :  { %s338_s22 = smov 128   ;;  %s339_s23 = smov 8  }
  0x12   :  { %22 = dma.hbm_to_vmem [thread:$0]  %s412_s0, 1024, %s17_s13, [#allocation3], %s338_s22, %s338_s22, %s339_s23  }
  0x13   :  { %s340_s26 = smov [#allocation5]   ;;  %s287_s30 = scalar_lea.hbm %s413_s1, 512 }
  0x14   :  { %s28_s27 = sshll.u32 %s340_s26, 4  ;;  %p288_p8 = scmp.ne.s32.totalorder %s413_s1, %s287_s30  ;;  %s29_s27 = int_to_ptr.vmem [resolvable:$true] %s28_s27 }
  0x15   :  { %p291_p9 = scmp.lt.u32.totalorder %s287_s30, %s413_s1 }
  0x17   :  { %p293_p10 = pnand %p291_p9, %p288_p8 }
  0x19   :  { %296 = shalt.err (!%p293_p10)
}
  0x1a   :  { %s297_s8 = scalar_lea.vmem %s29_s27, 512  ;;  %p302_p12 = scmp.lt.s32.totalorder %s29_s27, %s29_s27 }
  0x1b   :  { %p298_p11 = scmp.ne.s32.totalorder %s29_s27, %s297_s8  ;;  %p303_p13 = scmp.lt.s32.totalorder %s297_s8, %s297_s8 }
  0x1d   :  { %p304_p0 = por %p303_p13, %p302_p12 }
  0x1f   :  { %p305_p1 = pnand %p304_p0, %p298_p11 }
  0x21   :  { %308 = shalt.err (!%p305_p1)
}
  0x22   :  { %34 = dma.hbm_to_vmem [thread:$0]  %s413_s1, 512, %s29_s27, [#allocation6], %s338_s22, %s338_s22, %s339_s23  }
  0x23   :  { %331 = dma.done.wait [#allocation3], 1024  }
  0x24   :  { %332 = vsyncadd [#allocation3], 4294966272 }
  0x25   :  { %333 = dma.done.wait [#allocation6], 512  }
  0x26   :  { %334 = vsyncadd [#allocation6], 4294966784  ;;  %vm51_vm0 = vcmask 523264   ;;  %v47_v0 = vld [vmem:[#allocation2 + $0x20] sm:$0xff]  ;;  %v48_v2 = vld [vmem:[#allocation2 + $0x28] sm:$0xff]  ;;  %v341_v19 = vmov 0.0|0.0   ;;  %v95_v24 = vlaneseq }
  0x27   :  { %v43_v1 = vld [vmem:[#allocation2] sm:$0xff]  ;;  %v64_v3 = vsel %vm51_vm0, %v47_v0, 0.0  ;;  %v44_v5 = vld [vmem:[#allocation2 + $0x8] sm:$0xff]  ;;  %v67_v6 = vsel %vm51_vm0, %v48_v2, 0.0  ;;  %v49_v8 = vld [vmem:[#allocation2 + $0x30] sm:$0xff]  ;;  %251 = vmatprep.subr.bf16.mxu0 %v341_v19  ;;  %vm342_vm1 = vmmov 0  }
  0x28   :  { %v52_v4 = vsel %vm51_vm0, %v43_v1, 0.0  ;;  %65 = vadd.xlane.f32.xlu1 %v64_v3  ;;  %v55_v7 = vsel %vm51_vm0, %v44_v5, 0.0  ;;  %v45_v9 = vld [vmem:[#allocation2 + $0x10] sm:$0xff]  ;;  %v70_v10 = vsel %vm51_vm0, %v49_v8, 0.0  ;;  %v50_v12 = vld [vmem:[#allocation2 + $0x38] sm:$0xff]  ;;  %v76_v16 = vld [vmem:[#allocation5] sm:$0xff] }
  0x29   :  { %53 = vadd.xlane.f32.xlu0 %v52_v4  ;;  %v58_v11 = vsel %vm51_vm0, %v45_v9, 0.0  ;;  %v46_v13 = vld [vmem:[#allocation2 + $0x18] sm:$0xff]  ;;  %v73_v14 = vsel %vm51_vm0, %v50_v12, 0.0  ;;  %v77_v17 = vld [vmem:[#allocation5 + $0x8] sm:$0xff]  ;;  %v78_v20 = vld [vmem:[#allocation5 + $0x10] sm:$0xff]  ;;  %v343_v23 = vmov 0.0  }
  0x2a   :  { %v61_v15 = vsel %vm51_vm0, %v46_v13, 0.0  ;;  %v252_v18 = vpack.c.bf16 %v77_v17, %v76_v16  ;;  %v79_v21 = vld [vmem:[#allocation5 + $0x18] sm:$0xff]  ;;  %248 = vmatprep.mubr.msk.f32.mxu0 %vm342_vm1, %v343_v23  ;;  %v96_v25 = vand.u32 127, %v95_v24  ;;  %v98_v30 = vshrl.u32 %v95_v24, 7  ;;  %v233_v57 = vld [vmem:[%s414_s2] ss:$0 sm:$0xff] }
  0x2b   :  { %v255_v22 = vpack.c.bf16 %v79_v21, %v78_v20  ;;  %vm106_vm2 = vcmask 130112   ;;  %vm113_vm3 = vcmask 195712   ;;  %vm120_vm4 = vcmask 261312   ;;  %s344_s11 = smov [#allocation7]  }
  0x2c   :  { %68 = vadd.xlane.f32.xlu1 %v67_v6  ;;  %253 = vmatpush3.bf16.msra.mxu0 %v252_v18  ;;  %v101_v28 = vadd.s32 4294967288, %v96_v25  ;;  %v108_v29 = vadd.s32 4294967280, %v96_v25  ;;  %v115_v34 = vadd.s32 4294967272, %v96_v25  ;;  %v99_v36 = vsub.s32 %v96_v25, %v98_v30  ;;  %s223_s12 = sshll.u32 %s344_s11, 4  ;;  %s224_s12 = int_to_ptr.vmem [resolvable:$true] %s223_s12 }
  0x2d   :  { %56 = vadd.xlane.f32.xlu0 %v55_v7  ;;  %254 = vmatprep.subr.bf16.mxu0 %v341_v19  ;;  %vm141_vm5 = vcmask 1041409   ;;  %vm143_vm6 = vcmask 261120   ;;  %s309_s13 = scalar_lea.vmem %s224_s12, 32  ;;  %p314_p3 = scmp.lt.s32.totalorder %s224_s12, %s224_s12 }
  0x2e   :  { %v104_v33 = vsub.s32 %v101_v28, %v98_v30  ;;  %v111_v35 = vsub.s32 %v108_v29, %v98_v30  ;;  %v118_v41 = vsub.s32 %v115_v34, %v98_v30  ;;  %p310_p2 = scmp.ne.s32.totalorder %s224_s12, %s309_s13  ;;  %p315_p4 = scmp.lt.s32.totalorder %s309_s13, %s309_s13 }
  0x30   :  { %71 = vadd.xlane.f32.xlu1 %v70_v10  ;;  %256 = vmatpush3.bf16.msra.mxu0 %v255_v22  ;;  %p316_p5 = por %p315_p4, %p314_p3 }
  0x31   :  { %59 = vadd.xlane.f32.xlu0 %v58_v11 }
  0x32   :  { %p317_p6 = pnand %p316_p5, %p310_p2 }
  0x34   :  { %74 = vadd.xlane.f32.xlu1 %v73_v14 }
  0x35   :  { %62 = vadd.xlane.f32.xlu0 %v61_v15 }
  0xb5   :  { %v66_v26 = vpop.xlane.xlu1 %65 }
  0xb6   :  { %v54_v27 = vpop.xlane.xlu0 %53  ;;  %v125_v44 = vrot.slane %v66_v26, %v99_v36 }
  0xb7   :  { %v100_v45 = vrot.slane %v54_v27, %v99_v36 }
  0xb9   :  { %v69_v31 = vpop.xlane.xlu1 %68 }
  0xba   :  { %v57_v32 = vpop.xlane.xlu0 %56  ;;  %v129_v39 = vrot.slane %v69_v31, %v104_v33 }
  0xbb   :  { %v105_v40 = vrot.slane %v57_v32, %v104_v33 }
  0xbc   :  { %v130_v48 = vsel %vm106_vm2, %v129_v39, %v125_v44 }
  0xbd   :  { %v72_v37 = vpop.xlane.xlu1 %71  ;;  %v107_v49 = vsel %vm106_vm2, %v105_v40, %v100_v45 }
  0xbe   :  { %v60_v38 = vpop.xlane.xlu0 %59  ;;  %v134_v42 = vrot.slane %v72_v37, %v111_v35 }
  0xbf   :  { %v112_v43 = vrot.slane %v60_v38, %v111_v35 }
  0xc0   :  { %v135_v52 = vsel %vm113_vm3, %v134_v42, %v130_v48 }
  0xc1   :  { %v75_v46 = vpop.xlane.xlu1 %74  ;;  %v114_v53 = vsel %vm113_vm3, %v112_v43, %v107_v49 }
  0xc2   :  { %v63_v47 = vpop.xlane.xlu0 %62  ;;  %v139_v50 = vrot.slane %v75_v46, %v118_v41 }
  0xc3   :  { %v119_v51 = vrot.slane %v63_v47, %v118_v41 }
  0xc4   :  { %v140_v54 = vsel %vm120_vm4, %v139_v50, %v135_v52 }
  0xc5   :  { %v121_v55 = vsel %vm120_vm4, %v119_v51, %v114_v53 }
  0xc6   :  { %v142_v56 = vsel %vm141_vm5, %v140_v54, %v121_v55 }
  0xc7   :  { %249 = vmatmul.mubr.msk.f32.vlgmr.msra.gmra.mrb[0].mxu0 %vm143_vm6, %v142_v56 }
 0x19a   :  { %v212_v58 = vpop.f32.mrb[0].mxu0 }
 0x19b   :  { %v213_v59 = vadd.f32 %v233_v57, %v212_v58  ;;  %v250_v60 = vpop.f32.mrb[1].mxu0 }
 0x19d   :  { %216 = vst [vmem:[#allocation7] sm:$0x3] %v213_v59 }
 0x19e   :  { %320 = shalt.err (!%p317_p6)
}
 0x19f   :  { %s321_s16 = scalar_lea.hbm %s415_s3, 32 }
 0x1a0   :  { %p322_p7 = scmp.ne.s32.totalorder %s415_s3, %s321_s16  ;;  %p325_p8 = scmp.lt.u32.totalorder %s321_s16, %s415_s3 }
 0x1a2   :  { %p327_p9 = pnand %p325_p8, %p322_p7 }
 0x1a4   :  { %330 = shalt.err (!%p327_p9)
}
 0x1a5   :  { %226 = dma.vmem_to_hbm [thread:$0]  %s224_s12, 32, %s415_s3, [#allocation4]  }
 0x1a6   :  { %335 = dma.done.wait [#allocation4], 32  }
 0x1a7   :  { %336 = vsyncadd [#allocation4], 4294967264 }
 0x1a8   :  { %230 = vsyncpa [#allocation3], 1 }
 0x1a9   :  { %231 = vsyncpa [#allocation6], 1 }
 0x1aa   :  { %232 = vsyncpa [#allocation4], 1 }

</bundles_post_ra>
